<compile_context>
chip_gen: v5e
topology: v5e:2x2
jax: 0.10.0
libtpu: 0.0.40
codegen_flags: <defaults>
</compile_context>

<pallas_src>
import functools

import jax
import jax.numpy as jnp
from jax.experimental import pallas as pl
from jax.experimental.pallas import tpu as pltpu

ALPHA = 0.5
GAMMA = 2.0

_LANES = 128


def _round_up(x, m):
    return ((x + m - 1) // m) * m


def _tpu_plan_params():
    """Per-generation (max_tile_rows, num_tensorcores_to_split_over)."""
    try:
        kind = jax.devices()[0].device_kind.lower()
    except Exception:
        kind = ""
    if "v7" in kind:
        # 64 MiB physical VMEM / 32 MiB scoped default, 2 TCs/chip, 3.2 TB/s HBM:
        # 8192-row f32 tiles keep double-buffering alive (16 MiB of input buffers).
        return 8192, 2
    if "v6" in kind:
        # 128 MiB VMEM (32 MiB scoped default), single TensorCore.
        return 8192, 1
    if "v5e" in kind or "v5 lite" in kind or "v5lite" in kind:
        # 16 MiB scoped-VMEM default: cap at 4096 rows -> 8 MiB of input buffers.
        return 4096, 1
    # Unknown / older chips: conservative, single-core.
    return 4096, 1


def _bce_lane_sum_kernel(p_ref, t_ref, out_ref, *, rows, tile_rows, bpc, needs_mask):
    """Accumulate per-lane sums of element-wise BCE into the resident (1,128) out block."""
    c = pl.program_id(0)   # TensorCore split (size 1 on single-TC chips)
    i = pl.program_id(1)   # reduction ("arbitrary") axis

    @pl.when(i == 0)
    def _():
        out_ref[...] = jnp.zeros_like(out_ref)

    # Read in the input dtype (bf16 ok), upcast on the VPU just before the logs.
    p = p_ref[...].astype(jnp.float32)
    t = t_ref[...].astype(jnp.float32)

    # PyTorch's binary_cross_entropy clamps the log terms at -100.
    log_p = jnp.maximum(jnp.log(p), -100.0)
    log_1mp = jnp.maximum(jnp.log(1.0 - p), -100.0)
    # bce = -(t*log_p + (1-t)*log_1mp), refactored to save one multiply per element.
    bce = -(log_1mp + t * (log_p - log_1mp))

    if needs_mask:
        # Runtime-gated: only the ragged / overshoot tile pays for the mask;
        # interior tiles take the unmasked fast path.
        row0 = (c * bpc + i) * tile_rows

        @pl.when(row0 + tile_rows <= rows)
        def _():
            out_ref[...] += jnp.sum(bce, axis=0, keepdims=True)

        @pl.when(row0 + tile_rows > rows)
        def _():
            row_ids = row0 + jax.lax.broadcasted_iota(jnp.int32, bce.shape, 0)
            # Keep this a select (jnp.where) so NaN/Inf from OOB rows cannot leak.
            masked = jnp.where(row_ids < rows, bce, 0.0)
            out_ref[...] += jnp.sum(masked, axis=0, keepdims=True)
    else:
        out_ref[...] += jnp.sum(bce, axis=0, keepdims=True)


def focal_loss(inputs, targets, alpha=ALPHA, gamma=GAMMA):
    """inputs, targets: arbitrary (matching) shapes of probabilities / labels."""
    p = jnp.ravel(inputs)
    t = jnp.ravel(targets)
    n = p.shape[0]

    # Lane-align only if needed. Pad values p=1, t=1 contribute exactly 0 to the
    # BCE sum, and the mean divides by the original n.
    # TODO(synk): for n % 128 != 0 this pad materializes a full copy of both
    # streams in HBM; a truly zero-copy ragged path needs memory_space=pl.ANY +
    # manual DMA over the raw 1-D buffers, not worth the complexity here.
    rem = n % _LANES
    if rem != 0:
        pad = _LANES - rem
        p = jnp.pad(p, (0, pad), constant_values=1)
        t = jnp.pad(t, (0, pad), constant_values=1)

    rows = p.shape[0] // _LANES
    p2 = p.reshape(rows, _LANES)   # metadata-only reshape
    t2 = t.reshape(rows, _LANES)

    max_tile_rows, num_cores = _tpu_plan_params()

    # Sublane multiple for the block's second-minor dim (f32: 8, bf16: 16, int8: 32).
    itemsize = max(1, jnp.dtype(p2.dtype).itemsize)
    sub = 8 * max(1, 4 // itemsize)

    if rows < num_cores * sub:
        num_cores = 1   # too small to bother splitting across TensorCores

    if num_cores == 1 and rows <= max_tile_rows:
        # Whole slab as one full-extent block: no masking, single grid step.
        bpc, tile_rows, needs_mask = 1, rows, False
    else:
        # Even split: total logical blocks = num_cores * bpc (a multiple of the
        # core count by construction -> no wasted overshoot DMA on the 2-TC split).
        bpc = max(1, pl.cdiv(rows, num_cores * max_tile_rows))
        tile_rows = _round_up(pl.cdiv(rows, num_cores * bpc), sub)
        needs_mask = num_cores * bpc * tile_rows != rows

    rblocks = pl.cdiv(rows, tile_rows)  # real blocks in the array

    def in_map(c, i):
        blk = c * bpc + i
        # Clamp so a (fully masked) overshoot step never indexes past the array.
        return (jnp.minimum(blk, rblocks - 1), 0)

    spec = pl.BlockSpec((tile_rows, _LANES), in_map)

    if num_cores == 2:
        # Only CORE_PARALLEL reliably shards a grid axis across v7x's two TCs.
        dim_sems = (pltpu.CORE_PARALLEL, pltpu.ARBITRARY)
    else:
        dim_sems = ("arbitrary", "arbitrary")

    kernel = functools.partial(
        _bce_lane_sum_kernel,
        rows=rows, tile_rows=tile_rows, bpc=bpc, needs_mask=needs_mask,
    )

    # Per-core, per-lane partial sums of the element-wise BCE.
    partials = pl.pallas_call(
        kernel,
        out_shape=jax.ShapeDtypeStruct((num_cores, _LANES), jnp.float32),
        grid_spec=pltpu.PrefetchScalarGridSpec(
            num_scalar_prefetch=0,
            grid=(num_cores, bpc),
            in_specs=[spec, spec],
            out_specs=pl.BlockSpec((1, _LANES), lambda c, i: (c, 0)),
        ),
        compiler_params=pltpu.CompilerParams(dimension_semantics=dim_sems),
    )(p2, t2)

    # Scalar epilogue in plain JAX (runs once per call).
    bce = jnp.sum(partials) / jnp.float32(n)
    bce_exp = jnp.exp(-bce)
    return alpha * (1.0 - bce_exp) ** gamma * bce


def _focal_loss_ref(inputs, targets, alpha=ALPHA, gamma=GAMMA):
    p = jnp.ravel(inputs).astype(jnp.float32)
    t = jnp.ravel(targets).astype(jnp.float32)
    log_p = jnp.maximum(jnp.log(p), -100.0)
    log_1mp = jnp.maximum(jnp.log(1.0 - p), -100.0)
    bce = jnp.mean(-(t * log_p + (1.0 - t) * log_1mp))
    return alpha * (1.0 - jnp.exp(-bce)) ** gamma * bce


if __name__ == "__main__":
    key = jax.random.PRNGKey(0)
    k1, k2 = jax.random.split(key)

    B, C, H, W = 2, 4, 16, 16  # NCHW, small synthetic shapes
    logits = jax.random.normal(k1, (B, C, H, W), dtype=jnp.float32)
    inputs = jax.nn.sigmoid(logits)  # probabilities in (0, 1)
    targets = (jax.random.uniform(k2, (B, C, H, W)) > 0.5).astype(jnp.float32)

    loss = jax.block_until_ready(focal_loss(inputs, targets))
    ref = jax.block_until_ready(_focal_loss_ref(inputs, targets))

    assert jnp.allclose(loss, ref, rtol=1e-5, atol=1e-6), (loss, ref)
    print("KERNEL_OK")
</pallas_src>

<mosaic_0001>
module attributes {stable_mosaic.version = 11 : i64} {
  func.func @_bce_lane_sum_kernel(%arg0: i32, %arg1: i32, %arg2: memref<16x128xf32, #tpu.memory_space<vmem>>, %arg3: memref<16x128xf32, #tpu.memory_space<vmem>>, %arg4: memref<1x128xf32, #tpu.memory_space<vmem>>) attributes {dimension_semantics = [#tpu.dimension_semantics<arbitrary>, #tpu.dimension_semantics<arbitrary>], iteration_bounds = array<i64: 1, 1>, scalar_prefetch = 0 : i64, scratch_operands = 0 : i64, tpu.core_type = #tpu.core_type<tc>, window_params = [{transform_indices = @transform_0, window_bounds = array<i64: 16, 128>}, {transform_indices = @transform_1, window_bounds = array<i64: 16, 128>}, {transform_indices = @transform_2, window_bounds = array<i64: 1, 128>}]} {
    %c0_i32 = arith.constant 0 : i32
    %0 = arith.cmpi eq, %arg1, %c0_i32 : i32
    %1 = arith.extui %0 : i1 to i32
    %c0_i32_0 = arith.constant 0 : i32
    %2 = arith.cmpi ne, %1, %c0_i32_0 : i32
    scf.if %2 {
      %cst_12 = arith.constant 0.000000e+00 : f32
      %23 = vector.broadcast %cst_12 : f32 to vector<1x128xf32>
      %c0_13 = arith.constant 0 : index
      %c0_14 = arith.constant 0 : index
      %24 = vector.load %arg4[%c0_13, %c0_14] : memref<1x128xf32, #tpu.memory_space<vmem>>, vector<1x128xf32>
      tpu.vector_store %arg4[%c0_13, %c0_14], %23 {strides = array<i32>} : memref<1x128xf32, #tpu.memory_space<vmem>>, vector<1x128xf32>,
    } else {
    }
    %c0 = arith.constant 0 : index
    %c0_1 = arith.constant 0 : index
    %3 = vector.load %arg2[%c0, %c0_1] : memref<16x128xf32, #tpu.memory_space<vmem>>, vector<16x128xf32>
    %c0_2 = arith.constant 0 : index
    %c0_3 = arith.constant 0 : index
    %4 = vector.load %arg3[%c0_2, %c0_3] : memref<16x128xf32, #tpu.memory_space<vmem>>, vector<16x128xf32>
    %5 = math.log %3 : vector<16x128xf32>
    %cst = arith.constant -1.000000e+02 : f32
    %6 = vector.broadcast %cst : f32 to vector<16x128xf32>
    %7 = arith.maximumf %5, %6 : vector<16x128xf32>
    %cst_4 = arith.constant 1.000000e+00 : f32
    %8 = vector.broadcast %cst_4 : f32 to vector<16x128xf32>
    %9 = arith.subf %8, %3 : vector<16x128xf32>
    %10 = math.log %9 : vector<16x128xf32>
    %cst_5 = arith.constant -1.000000e+02 : f32
    %11 = vector.broadcast %cst_5 : f32 to vector<16x128xf32>
    %12 = arith.maximumf %10, %11 : vector<16x128xf32>
    %13 = arith.subf %7, %12 : vector<16x128xf32>
    %14 = arith.mulf %4, %13 : vector<16x128xf32>
    %15 = arith.addf %12, %14 : vector<16x128xf32>
    %cst_6 = arith.constant 0.000000e+00 : f32
    %16 = vector.broadcast %cst_6 : f32 to vector<16x128xf32>
    %17 = arith.subf %16, %15 : vector<16x128xf32>
    %c0_7 = arith.constant 0 : index
    %c0_8 = arith.constant 0 : index
    %18 = vector.load %arg4[%c0_7, %c0_8] : memref<1x128xf32, #tpu.memory_space<vmem>>, vector<1x128xf32>
    %cst_9 = arith.constant dense<0.000000e+00> : vector<128xf32>
    %19 = vector.multi_reduction <add>, %17, %cst_9 [0] : vector<16x128xf32> to vector<128xf32>
    %20 = vector.shape_cast %19 : vector<128xf32> to vector<1x128xf32>
    %21 = arith.addf %18, %20 : vector<1x128xf32>
    %c0_10 = arith.constant 0 : index
    %c0_11 = arith.constant 0 : index
    %22 = vector.load %arg4[%c0_10, %c0_11] : memref<1x128xf32, #tpu.memory_space<vmem>>, vector<1x128xf32>
    tpu.vector_store %arg4[%c0_10, %c0_11], %21 {strides = array<i32>} : memref<1x128xf32, #tpu.memory_space<vmem>>, vector<1x128xf32>,
    return
  }
  func.func @transform_0(%arg0: i32, %arg1: i32) -> (i32, i32) {
    %c1_i32 = arith.constant 1 : i32
    %0 = arith.muli %arg0, %c1_i32 : i32
    %1 = arith.addi %0, %arg1 : i32
    %c0_i32 = arith.constant 0 : i32
    %2 = arith.minsi %1, %c0_i32 : i32
    %c0_i32_0 = arith.constant 0 : i32
    %c0_i32_1 = arith.constant 0 : i32
    return %2, %c0_i32_0 : i32, i32
  }
  func.func @transform_1(%arg0: i32, %arg1: i32) -> (i32, i32) {
    %c1_i32 = arith.constant 1 : i32
    %0 = arith.muli %arg0, %c1_i32 : i32
    %1 = arith.addi %0, %arg1 : i32
    %c0_i32 = arith.constant 0 : i32
    %2 = arith.minsi %1, %c0_i32 : i32
    %c0_i32_0 = arith.constant 0 : i32
    %c0_i32_1 = arith.constant 0 : i32
    return %2, %c0_i32_0 : i32, i32
  }
  func.func @transform_2(%arg0: i32, %arg1: i32) -> (i32, i32) {
    %c0_i32 = arith.constant 0 : i32
    %c0_i32_0 = arith.constant 0 : i32
    return %arg0, %c0_i32 : i32, i32
  }
}

</mosaic_0001>

<bundles_post_ra>
// kernel: tpu_custom_call.1
= control target key start
LH: loop header
LB: loop body
LE: loop exit
PB: predicated region body
PF: predicated region fallthrough
CT: control target
= control target key end

     0   :  { %7 = vsyncpa [#allocation3], 0  ;;  %s249_s0 = inlined_call_operand.hbm [shape: f32[16,128], index: 0, kind: input, shape index: {}]   ;;  %s250_s1 = inlined_call_operand.hbm [shape: f32[16,128], index: 1, kind: input, shape index: {}]   ;;  %s251_s2 = inlined_call_operand.hbm [shape: f32[1,128], index: 2, kind: output, shape index: {}]  }
   0x1   :  { %8 = vsyncpa [#allocation6], 0 }
   0x2   :  { %9 = vsyncpa [#allocation4], 0  ;;  %s20_s11 = sshll.u32 %s249_s0, 4  ;;  %s219_s12 = smov [#allocation2]   ;;  %s21_s11 = int_to_ptr.hbm [resolvable:$true] %s20_s11 }
   0x3   :  { %s22_s13 = sshll.u32 %s219_s12, 4  ;;  %s39_s16 = sshll.u32 %s250_s1, 4  ;;  %s23_s13 = int_to_ptr.vmem [resolvable:$true] %s22_s13  ;;  %s40_s16 = int_to_ptr.hbm [resolvable:$true] %s39_s16 }
   0x4   :  { %s220_s17 = smov 128   ;;  %s221_s18 = smov 8  }
   0x5   :  { %28 = dma.hbm_to_vmem [thread:$0]  %s21_s11, 256, %s23_s13, [#allocation3], %s220_s17, %s220_s17, %s221_s18  }
   0x6   :  { %s222_s19 = smov [#allocation5]  }
   0x7   :  { %s41_s20 = sshll.u32 %s222_s19, 4  ;;  %s42_s20 = int_to_ptr.vmem [resolvable:$true] %s41_s20 }
   0x8   :  { %47 = dma.hbm_to_vmem [thread:$0]  %s40_s16, 256, %s42_s20, [#allocation6], %s220_s17, %s220_s17, %s221_s18  }
   0x9   :  { %213 = dma.done.wait [#allocation3], 256  }
   0xa   :  { %214 = vsyncadd [#allocation3], 4294967040 }
   0xb   :  { %215 = dma.done.wait [#allocation6], 256  }
   0xc   :  { %216 = vsyncadd [#allocation6], 4294967040  ;;  %v223_v0 = vmov 0.0   ;;  %v69_v1 = vld [vmem:[#allocation2] sm:$0xff]  ;;  %v70_v2 = vld [vmem:[#allocation2 + $0x8] sm:$0xff]  ;;  %s224_s0 = smov [#allocation7]  }
   0xd   :  { %68 = vst [vmem:[#allocation7] sm:$0x1] %v223_v0  ;;  %133 = vlog2.f32 %v69_v1  ;;  %v79_v3 = vsub.f32 1.0, %v69_v1  ;;  %v80_v4 = vsub.f32 1.0, %v70_v2  ;;  %v71_v16 = vld [vmem:[#allocation5] sm:$0xff]  ;;  %v72_v18 = vld [vmem:[#allocation5 + $0x8] sm:$0xff] }
   0xe   :  { %135 = vlog2.f32 %v70_v2  ;;  %s110_s1 = sshll.u32 %s224_s0, 4  ;;  %s112_s23 = sshll.u32 %s251_s2, 4  ;;  %s111_s1 = int_to_ptr.vmem [resolvable:$true] %s110_s1  ;;  %s113_s23 = int_to_ptr.hbm [resolvable:$true] %s112_s23 }
   0xf   :  { %137 = vlog2.f32 %v79_v3 }
  0x10   :  { %139 = vlog2.f32 %v80_v4 }
  0x13   :  { %v134_v5 = vpop.eup %133 }
  0x14   :  { %v136_v6 = vpop.eup %135  ;;  %v74_v7 = vmul.f32 0.6931472, %v134_v5  ;;  %v95_v33 = vld [vmem:[#allocation7] sm:$0x1] }
  0x15   :  { %v138_v8 = vpop.eup %137  ;;  %v76_v9 = vmul.f32 0.6931472, %v136_v6 }
  0x16   :  { %v140_v10 = vpop.eup %139  ;;  %v77_v11 = vmax.f32 %v74_v7, -100.0  ;;  %v82_v12 = vmul.f32 0.6931472, %v138_v8 }
  0x17   :  { %v78_v13 = vmax.f32 %v76_v9, -100.0  ;;  %v84_v14 = vmul.f32 0.6931472, %v140_v10 }
  0x18   :  { %v85_v15 = vmax.f32 %v82_v12, -100.0 }
  0x19   :  { %v86_v17 = vmax.f32 %v84_v14, -100.0 }
  0x1a   :  { %v87_v19 = vsub.f32 %v77_v11, %v85_v15 }
  0x1b   :  { %v88_v20 = vsub.f32 %v78_v13, %v86_v17 }
  0x1c   :  { %v89_v21 = vmul.f32 %v87_v19, %v71_v16 }
  0x1d   :  { %v90_v22 = vmul.f32 %v88_v20, %v72_v18 }
  0x1e   :  { %v91_v23 = vadd.f32 %v89_v21, %v85_v15 }
  0x1f   :  { %v92_v24 = vadd.f32 %v90_v22, %v86_v17 }
  0x20   :  { %v93_v25 = vsub.f32 0.0, %v91_v23 }
  0x21   :  { %v94_v26 = vsub.f32 0.0, %v92_v24 }
  0x23   :  { %v96_v27 = vadd.f32 %v94_v26, %v93_v25 }
  0x25   :  { %v97_v28 = vrot.slane %v96_v27, 4 }
  0x27   :  { %v98_v29 = vadd.f32 %v97_v28, %v96_v27 }
  0x29   :  { %v99_v30 = vrot.slane %v98_v29, 2 }
  0x2b   :  { %v100_v31 = vadd.f32 %v99_v30, %v98_v29 }
  0x2d   :  { %v101_v32 = vrot.slane %v100_v31, 1 }
  0x2f   :  { %v102_v34 = vadd.f32 %v101_v32, %v100_v31 }
  0x31   :  { %v103_v35 = vadd.f32 %v102_v34, %v95_v33 }
  0x33   :  { %104 = vst [vmem:[#allocation7] sm:$0x1] %v103_v35 }
  0x34   :  { %115 = dma.vmem_to_hbm [thread:$0]  %s111_s1, 16, %s113_s23, [#allocation4]  }
  0x35   :  { %217 = dma.done.wait [#allocation4], 16  }
  0x36   :  { %218 = vsyncadd [#allocation4], 4294967280 }
  0x37   :  { %120 = vsyncpa [#allocation3], 1 }
  0x38   :  { %121 = vsyncpa [#allocation6], 1 }
  0x39   :  { %122 = vsyncpa [#allocation4], 1 }

</bundles_post_ra>
